<compile_context>
chip_gen: v6e
topology: v6e:2x2x1
jax: 0.10.0
libtpu: 0.0.40
codegen_flags: <defaults>
</compile_context>

<pallas_src>
import functools

import jax
import jax.numpy as jnp
from jax.experimental import pallas as pl
from jax.experimental.pallas import tpu as pltpu


# --------------------------------- conv mode ---------------------------------

def _conv_kernel(p_ref, w_ref, b_ref, o_ref):
    # p_ref: (1, K, st) transposed patches   w_ref: (C_out, K) folded weight
    # b_ref: (C_out, 1) f32 bias             o_ref: (1, C_out, st)
    acc = jnp.dot(w_ref[...], p_ref[0], preferred_element_type=jnp.float32)
    o_ref[...] = (acc + b_ref[...])[None].astype(o_ref.dtype)


def _pick_spatial_tile(S, B, K, C_out, in_itemsize, out_itemsize,
                       target=2048, vmem_budget=24 << 20):
    """Large, lane-aligned spatial tile that fits double-buffered VMEM."""
    st = S if S <= target else target  # target is a multiple of 128

    def vmem_est(t):
        return (2 * K * t * in_itemsize          # patch tile (double buffered)
                + 2 * C_out * t * out_itemsize   # output tile (double buffered)
                + 2 * K * C_out * in_itemsize    # weight block
                + 2 * C_out * 4)                 # bias block

    # Stay well under the default scoped-VMEM limit (v7x only has 64 MiB).
    while st % 256 == 0 and vmem_est(st) > vmem_budget:
        st //= 2
    # v7x has two TensorCores: make sure the (parallel) grid has >= 2 steps.
    if B * pl.cdiv(S, st) < 2 and st % 256 == 0:
        st //= 2
    return st


def _conv_patch_gemm(patches_t, w_t, bias_col, out_dtype):
    B, K, S = patches_t.shape
    C_out = w_t.shape[0]
    st = _pick_spatial_tile(S, B, K, C_out, patches_t.dtype.itemsize,
                            jnp.dtype(out_dtype).itemsize)
    return pl.pallas_call(
        _conv_kernel,
        out_shape=jax.ShapeDtypeStruct((B, C_out, S), out_dtype),
        grid_spec=pltpu.PrefetchScalarGridSpec(
            num_scalar_prefetch=0,
            grid=(B, pl.cdiv(S, st)),   # cdiv grid: partial edge tiles are fine
            in_specs=[
                pl.BlockSpec((1, K, st), lambda b, s: (b, 0, s)),
                # Constant-index blocks: Pallas DMAs them only once (their block
                # index never changes), so no extra buffering tricks needed.
                pl.BlockSpec((C_out, K), lambda b, s: (0, 0)),
                pl.BlockSpec((C_out, 1), lambda b, s: (0, 0)),
            ],
            out_specs=pl.BlockSpec((1, C_out, st), lambda b, s: (b, 0, s)),
        ),
        compiler_params=pltpu.CompilerParams(
            dimension_semantics=("parallel", "parallel")),
    )(patches_t, w_t, bias_col)


@functools.partial(jax.jit, static_argnames=("compute_dtype",))
def _conv_forward(x, w_t, bias_col, *, compute_dtype):
    B, C, D, H, W = x.shape
    Do, Ho, Wo = D // 2, H // 2, W // 2
    S = Do * Ho * Wo
    C_out = w_t.shape[0]
    # Regroup x -> transposed patches [B, K, S], K ordered (c_in, kd, kh, kw).
    # Single XLA pass; the dtype convert fuses into the transpose under jit.
    xr = x.astype(compute_dtype).reshape(B, C, Do, 2, Ho, 2, Wo, 2)
    patches_t = jnp.transpose(xr, (0, 1, 3, 5, 7, 2, 4, 6)).reshape(B, C * 8, S)
    out = _conv_patch_gemm(patches_t, w_t.astype(compute_dtype), bias_col,
                           x.dtype)
    return out.reshape(B, C_out, Do, Ho, Wo)   # free reshape -> NCDHW


# -------------------------------- avgpool mode --------------------------------

def _avgpool_kernel(x_ref, p_ref, o_ref):
    # x_ref: (1, ct, 1, 2, Ho, 2*W)   p_ref: (2*W, Wo)   o_ref: (1, ct, 1, Ho, Wo)
    v = x_ref[...]
    ct, Ho, L = v.shape[1], v.shape[4], v.shape[5]
    v = v.reshape(ct, 2, Ho, L)
    s = v[:, 0] + v[:, 1]                               # kd pair   (VPU)
    r = jnp.dot(s.reshape(ct * Ho, L), p_ref[...],      # kh/kw + /8 (MXU)
                preferred_element_type=jnp.float32)
    o_ref[...] = r.reshape(1, ct, 1, Ho, -1).astype(o_ref.dtype)


@jax.jit
def _avgpool_forward(x):
    B, C, D, H, W = x.shape
    Do, Ho, Wo = D // 2, H // 2, W // 2
    xv = x.reshape(B, C, Do, 2, Ho, 2 * W)   # free reshape, no data movement
    # (kh, kw) -> wo averaging matrix: P[kh*W + 2*wo + kw, wo] = 1/8.
    j = jnp.arange(2 * W)
    wo = jnp.arange(Wo)
    p = (((j[:, None] % W) // 2) == wo[None, :]).astype(x.dtype) * (1.0 / 8.0)
    # Channel tile: keep the double-buffered input block around ~4 MiB.
    per_c = 2 * Ho * 2 * W * x.dtype.itemsize
    ct = max(1, min(C, (4 << 20) // max(1, 2 * per_c)))
    return pl.pallas_call(
        _avgpool_kernel,
        out_shape=jax.ShapeDtypeStruct((B, C, Do, Ho, Wo), x.dtype),
        grid_spec=pltpu.PrefetchScalarGridSpec(
            num_scalar_prefetch=0,
            grid=(B, pl.cdiv(C, ct), Do),
            in_specs=[
                pl.BlockSpec((1, ct, 1, 2, Ho, 2 * W),
                             lambda b, c, d: (b, c, d, 0, 0, 0)),
                pl.BlockSpec((2 * W, Wo), lambda b, c, d: (0, 0)),
            ],
            out_specs=pl.BlockSpec((1, ct, 1, Ho, Wo),
                                   lambda b, c, d: (b, c, d, 0, 0)),
        ),
        compiler_params=pltpu.CompilerParams(
            dimension_semantics=("parallel", "parallel", "parallel")),
    )(xv, p)


# ---------------------------------- module -----------------------------------

class DownsampleBlock3d:
    """JAX/Pallas port of the PyTorch DownsampleBlock3d forward pass."""

    def __init__(self, in_channels, out_channels, mode="conv",
                 key=jax.random.PRNGKey(0), dtype=jnp.float32,
                 compute_dtype=jnp.bfloat16):
        assert mode in ("conv", "avgpool"), f"Invalid mode {mode}"
        self.in_channels = in_channels
        self.out_channels = out_channels
        self.mode = mode
        self.dtype = dtype
        self.compute_dtype = compute_dtype
        if mode == "conv":
            kw_key, kb_key = jax.random.split(key)
            fan_in = in_channels * 8
            bound = 1.0 / float(fan_in) ** 0.5
            # PyTorch OIDHW weight layout: [C_out, C_in, 2, 2, 2]
            self.weight = jax.random.uniform(
                kw_key, (out_channels, in_channels, 2, 2, 2),
                minval=-bound, maxval=bound, dtype=dtype)
            self.bias = jax.random.uniform(
                kb_key, (out_channels,), minval=-bound, maxval=bound, dtype=dtype)
            # GEMM form: [C_out, C_in*8] with K ordered (c_in, kd, kh, kw).
            self.w_t = self.weight.reshape(out_channels, in_channels * 8)
            self.bias_col = self.bias.reshape(out_channels, 1).astype(jnp.float32)
        else:
            assert in_channels == out_channels, \
                "Pooling mode requires in_channels to be equal to out_channels"

    def __call__(self, x):
        B, C, D, H, W = x.shape
        assert C == self.in_channels
        # PyTorch stride-2 conv / avg_pool3d silently drop trailing odd rows.
        if (D % 2) or (H % 2) or (W % 2):
            x = x[:, :, :D - D % 2, :H - H % 2, :W - W % 2]
        if self.mode == "avgpool":
            return _avgpool_forward(x)
        return _conv_forward(x, self.w_t, self.bias_col,
                             compute_dtype=self.compute_dtype)


def _conv_reference(x, weight, bias):
    y = jax.lax.conv_general_dilated(
        x, weight, window_strides=(2, 2, 2), padding="VALID",
        dimension_numbers=("NCDHW", "OIDHW", "NCDHW"))
    return y + bias[None, :, None, None, None]


if __name__ == "__main__":
    key = jax.random.PRNGKey(0)
    kx, kmod = jax.random.split(key)

    B, C_in, C_out, D, H, W = 2, 4, 8, 16, 16, 16
    x = jax.random.normal(kx, (B, C_in, D, H, W), dtype=jnp.float32)

    # conv mode, exact f32 compute path
    block_f32 = DownsampleBlock3d(C_in, C_out, mode="conv", key=kmod,
                                  compute_dtype=jnp.float32)
    y = jax.block_until_ready(block_f32(x))
    assert y.shape == (B, C_out, D // 2, H // 2, W // 2), y.shape
    y_ref = _conv_reference(x, block_f32.weight, block_f32.bias)
    err = float(jnp.max(jnp.abs(y - y_ref)))
    assert err < 1e-4, err

    # conv mode, default bf16 streaming (f32 accumulation) -- looser tolerance
    block_bf16 = DownsampleBlock3d(C_in, C_out, mode="conv", key=kmod)
    yb = jax.block_until_ready(block_bf16(x))
    err_b = float(jnp.max(jnp.abs(yb - y_ref)))
    assert err_b < 5e-2, err_b

    # avgpool mode (fused VPU/MXU kernel, no patch GEMM)
    block_pool = DownsampleBlock3d(C_in, C_in, mode="avgpool", key=kmod)
    yp = jax.block_until_ready(block_pool(x))
    yp_ref = jnp.mean(
        x.reshape(B, C_in, D // 2, 2, H // 2, 2, W // 2, 2), axis=(3, 5, 7))
    err_p = float(jnp.max(jnp.abs(yp - yp_ref)))
    assert err_p < 1e-5, err_p

    print("KERNEL_OK")
</pallas_src>

<mosaic_0001>
module attributes {stable_mosaic.version = 11 : i64} {
  func.func @_conv_kernel(%arg0: i32, %arg1: i32, %arg2: memref<1x32x512xf32, #tpu.memory_space<vmem>>, %arg3: memref<8x32xf32, #tpu.memory_space<vmem>>, %arg4: memref<8x1xf32, #tpu.memory_space<vmem>>, %arg5: memref<1x8x512xf32, #tpu.memory_space<vmem>>) attributes {dimension_semantics = [#tpu.dimension_semantics<parallel>, #tpu.dimension_semantics<parallel>], iteration_bounds = array<i64: 2, 1>, scalar_prefetch = 0 : i64, scratch_operands = 0 : i64, tpu.core_type = #tpu.core_type<tc>, window_params = [{transform_indices = @transform_0, window_bounds = array<i64: 1, 32, 512>}, {pipeline_mode = #tpu.pipeline_mode<synchronous>, transform_indices = @transform_1, window_bounds = array<i64: 8, 32>}, {pipeline_mode = #tpu.pipeline_mode<synchronous>, transform_indices = @transform_2, window_bounds = array<i64: 8, 1>}, {transform_indices = @transform_3, window_bounds = array<i64: 1, 8, 512>}]} {
    %c0 = arith.constant 0 : index
    %c0_0 = arith.constant 0 : index
    %0 = vector.load %arg3[%c0, %c0_0] : memref<8x32xf32, #tpu.memory_space<vmem>>, vector<8x32xf32>
    %c0_1 = arith.constant 0 : index
    %c0_2 = arith.constant 0 : index
    %c0_3 = arith.constant 0 : index
    %1 = vector.load %arg2[%c0_1, %c0_2, %c0_3] : memref<1x32x512xf32, #tpu.memory_space<vmem>>, vector<1x32x512xf32>
    %2 = vector.shape_cast %1 : vector<1x32x512xf32> to vector<32x512xf32>
    %cst = arith.constant dense<0.000000e+00> : vector<8x512xf32>
    %3 = tpu.matmul %0, %2, %cst {dimension_numbers = #tpu.dot_dimension_numbers<[1], [0], [0], [1], [0, 0, 1, 1], [], []>} : vector<8x32xf32>, vector<32x512xf32>, vector<8x512xf32> -> vector<8x512xf32>
    %c0_4 = arith.constant 0 : index
    %c0_5 = arith.constant 0 : index
    %4 = vector.load %arg4[%c0_4, %c0_5] : memref<8x1xf32, #tpu.memory_space<vmem>>, vector<8x1xf32>
    %5 = vector.broadcast %4 : vector<8x1xf32> to vector<8x512xf32>
    %6 = arith.addf %3, %5 : vector<8x512xf32>
    %7 = vector.shape_cast %6 : vector<8x512xf32> to vector<1x8x512xf32>
    %c0_6 = arith.constant 0 : index
    %c0_7 = arith.constant 0 : index
    %c0_8 = arith.constant 0 : index
    %8 = vector.load %arg5[%c0_6, %c0_7, %c0_8] : memref<1x8x512xf32, #tpu.memory_space<vmem>>, vector<1x8x512xf32>
    tpu.vector_store %arg5[%c0_6, %c0_7, %c0_8], %7 {strides = array<i32>} : memref<1x8x512xf32, #tpu.memory_space<vmem>>, vector<1x8x512xf32>,
    return
  }
  func.func @transform_0(%arg0: i32, %arg1: i32) -> (i32, i32, i32) {
    %c0_i32 = arith.constant 0 : i32
    %c0_i32_0 = arith.constant 0 : i32
    return %arg0, %c0_i32, %arg1 : i32, i32, i32
  }
  func.func @transform_1(%arg0: i32, %arg1: i32) -> (i32, i32) {
    %c0_i32 = arith.constant 0 : i32
    %c0_i32_0 = arith.constant 0 : i32
    %c0_i32_1 = arith.constant 0 : i32
    return %c0_i32, %c0_i32_0 : i32, i32
  }
  func.func @transform_2(%arg0: i32, %arg1: i32) -> (i32, i32) {
    %c0_i32 = arith.constant 0 : i32
    %c0_i32_0 = arith.constant 0 : i32
    %c0_i32_1 = arith.constant 0 : i32
    return %c0_i32, %c0_i32_0 : i32, i32
  }
  func.func @transform_3(%arg0: i32, %arg1: i32) -> (i32, i32, i32) {
    %c0_i32 = arith.constant 0 : i32
    %c0_i32_0 = arith.constant 0 : i32
    return %arg0, %c0_i32, %arg1 : i32, i32, i32
  }
}

</mosaic_0001>

<bundles_post_ra>
// kernel: _conv_forward.1
= control target key start
LH: loop header
LB: loop body
LE: loop exit
PB: predicated region body
PF: predicated region fallthrough
CT: control target
= control target key end

     0   :  { %s558_s12 = smov 0   ;;  %s560_s13 = smov 0   ;;  %s601_s0 = inlined_call_operand.vmem [shape: f32[2,32,512], index: 0, kind: input, shape index: {}]   ;;  %s602_s1 = inlined_call_operand.vmem [shape: f32[8,32], index: 1, kind: input, shape index: {}]   ;;  %s603_s2 = inlined_call_operand.vmem [shape: f32[8,1], index: 2, kind: input, shape index: {}]   ;;  %s604_s3 = inlined_call_operand.vmem [shape: f32[2,8,512], index: 3, kind: output, shape index: {}]  }
   0x1   :  { %s562_s14 = smov 0  }
   0x2 LB: > { %s25_s15 = sadd.s32 1, %s530_s13  ;;  %p474_p0 = scmp.ge.s32.totalorder %s534_s14, 1  ;;  %s534_s14 = sphi %s562_s14, %s13_s14   ;;  %s530_s13 = sphi %s560_s13, %s606_s13   ;;  %s526_s12 = sphi %s558_s12, %s605_s12  }
   0x3   : > { %p27_p1 = scmp.ge.s32.totalorder %s25_s15, 2  ;;  %p158_p2 = scmp.lt.s32.totalorder %s534_s14, 3 }
   0x5   : > { %s608_s15 = smov (%p27_p1, %s25_s15), 0  ;;  %p159_p3 = pnand %p474_p0, %p158_p2 }
   0x6   : > { %p191_p4 = scmp.lt.s32.totalorder (!%p159_p3), %s526_s12, 1 }
   0x7   : > { %162 = sbr.rel (%p159_p3) target bundleno = 222 (0xde), region = 32 }
   0xc   : > { %v227_v0 = vld [vmem:[%s603_s2] sm:$0xff]  ;;  %v536_v1 = vmov 0.0   ;;  %s610_s12 = smov (!%p191_p4, %s526_s12), 1  ;;  %v537_v2 = vmov 0   ;;  %vm233_vm0 = vcmask 261120  }
   0xd   : > { %301 = vmatprep.mubr.f32.mxu0 %v536_v1  ;;  %372 = vmatprep.mubr.f32.mxu1 %v536_v1  ;;  %s483_s18 = sshll.u32 %s610_s12, 7  ;;  %v210_v19 = vld [vmem:[%s602_s1] sm:$0xff]  ;;  %s484_s24 = sshll.u32 %s610_s12, 5 }
   0xe   : > { %511 = vset.pattern.permute.xlu0 %v537_v2  ;;  %s198_s21 = scalar_lea.vmem %s601_s0, %s483_s18  ;;  %s208_s27 = scalar_lea.vmem %s604_s3, %s484_s24 }
   0xf   : > { %230 = vperm.xlu0 %511, %v227_v0   ;;  %v224_v3 = vld [vmem:[%s198_s21 + $0x68] sm:$0xff]  ;;  %v226_v4 = vld [vmem:[%s198_s21 + $0x78] sm:$0xff]  ;;  %v223_v5 = vld [vmem:[%s198_s21 + $0x60] sm:$0xff] }
  0x10   : > { %261 = vmatprep.subr.mxu0 %v224_v3  ;;  %332 = vmatprep.subr.mxu1 %v226_v4  ;;  %v225_v6 = vld [vmem:[%s198_s21 + $0x70] sm:$0xff]  ;;  %v220_v7 = vld [vmem:[%s198_s21 + $0x48] sm:$0xff]  ;;  %v222_v8 = vld [vmem:[%s198_s21 + $0x58] sm:$0xff] }
  0x11   : > { %262 = vmatpush1.msra.mxu0 %v223_v5  ;;  %333 = vmatpush1.msra.mxu1 %v225_v6  ;;  %v219_v9 = vld [vmem:[%s198_s21 + $0x40] sm:$0xff]  ;;  %v221_v10 = vld [vmem:[%s198_s21 + $0x50] sm:$0xff]  ;;  %v216_v11 = vld [vmem:[%s198_s21 + $0x28] sm:$0xff] }
  0x12   : > { %263 = vmatprep.subr.mxu0 %v220_v7  ;;  %334 = vmatprep.subr.mxu1 %v222_v8  ;;  %v218_v12 = vld [vmem:[%s198_s21 + $0x38] sm:$0xff]  ;;  %v215_v13 = vld [vmem:[%s198_s21 + $0x20] sm:$0xff]  ;;  %v217_v14 = vld [vmem:[%s198_s21 + $0x30] sm:$0xff] }
  0x13   : > { %264 = vmatpush1.msra.mxu0 %v219_v9  ;;  %335 = vmatpush1.msra.mxu1 %v221_v10  ;;  %v212_v15 = vld [vmem:[%s198_s21 + $0x8] sm:$0xff]  ;;  %v214_v16 = vld [vmem:[%s198_s21 + $0x18] sm:$0xff]  ;;  %v211_v17 = vld [vmem:[%s198_s21] sm:$0xff] }
  0x14   : > { %265 = vmatprep.subr.mxu0 %v216_v11  ;;  %336 = vmatprep.subr.mxu1 %v218_v12  ;;  %v213_v18 = vld [vmem:[%s198_s21 + $0x10] sm:$0xff] }
  0x15   : > { %266 = vmatpush1.msra.mxu0 %v215_v13  ;;  %337 = vmatpush1.msra.mxu1 %v217_v14 }
  0x16   : > { %267 = vmatprep.subr.mxu0 %v212_v15  ;;  %338 = vmatprep.subr.mxu1 %v214_v16 }
  0x17   : > { %268 = vmatpush1.msra.mxu0 %v211_v17  ;;  %339 = vmatpush1.msra.mxu1 %v213_v18 }
  0x18   : > { %479 = vmatmul.mubr.msk.f32.vlgmr.msra.gmra.mxu0 %vm233_vm0, %v210_v19  ;;  %480 = vmatmul.mubr.msk.f32.vlgmr.msra.gmra.mxu1 %vm233_vm0, %v210_v19 }
  0x8a   : > { %v231_v20 = vpop.permute.xlu0 %230 }
  0xd8   : > { %v303_v21 = vpop.f32.mrf.mxu0  ;;  %v374_v22 = vpop.f32.mrf.mxu1 }
  0xd9   : > { %v304_v23 = vadd.f32 %v303_v21, %v231_v20  ;;  %v375_v24 = vadd.f32 %v374_v22, %v231_v20 }
  0xda   : > { %v305_v25 = vpop.f32.mrf.mxu0  ;;  %v376_v26 = vpop.f32.mrf.mxu1 }
  0xdb   : > { %379 = vst [vmem:[%s208_s27] sm:$0xff] %v304_v23  ;;  %381 = vst [vmem:[%s208_s27 + $0x10] sm:$0xff] %v375_v24  ;;  %v306_v27 = vadd.f32 %v305_v25, %v231_v20  ;;  %v377_v28 = vadd.f32 %v376_v26, %v231_v20 }
  0xdd   : > { %380 = vst [vmem:[%s208_s27 + $0x8] sm:$0xff] %v306_v27  ;;  %382 = vst [vmem:[%s208_s27 + $0x18] sm:$0xff] %v377_v28 }
  0xde PF: > { %s13_s14 = sadd.s32 1, %s534_s14   ;;  %s605_s12 = smov %s530_s13 }
  0xdf   : > { %p10_p5 = scmp.ge.s32.totalorder %s13_s14, 4   ;;  %s606_s13 = smov %s608_s15 }
  0xe1   :  { %12 = sbr.rel (!%p10_p5) target bundleno = 2 (0x2), region = 62 }

</bundles_post_ra>
